<compile_context>
chip_gen: v7x
topology: tpu7x:2x2x1
jax: 0.10.0
libtpu: 0.0.40
codegen_flags: <defaults>
</compile_context>

<pallas_src>
import functools

import jax
import jax.numpy as jnp
from jax.experimental import pallas as pl
from jax.experimental.pallas import tpu as pltpu


# ----------------------------- kernel -----------------------------------


def _softplus(x):
    # matches torch.nn.functional.softplus; numerically stable log(1+exp(x)).
    return jnp.logaddexp(x, 0.0)


def _ensemble_dynamics_kernel(num_hidden_layers, mean_width, mm_dtype,
                              x_ref, *refs):
    """One batch tile through ALL ensemble members.

    refs layout (weights are whole-array, VMEM-resident across grid steps):
      [w_0, b_0, ..., w_{L-1}, b_{L-1},   # lane-packed backbone layers
       w_head, b_head,                    # fused [mean | logvar] output head
       max_logvar, min_logvar,            # (1, total_out); only logvar lanes used
       out]                               # (tile_b, total_out) output tile
    """
    h = x_ref[...]                                        # (tile_b, d_in) f32

    # backbone: lane-packed EnsembleLinear -> Swish
    for l in range(num_hidden_layers):
        w = refs[2 * l][...]                              # stored in mm_dtype
        b = refs[2 * l + 1][...]                          # f32
        h = jnp.dot(h.astype(mm_dtype), w,
                    preferred_element_type=jnp.float32) + b
        h = h * jax.nn.sigmoid(h)                         # swish (f32 on VPU)

    base = 2 * num_hidden_layers
    w_head = refs[base][...]
    b_head = refs[base + 1][...]
    max_lv = refs[base + 2][...]                          # (1, total_out)
    min_lv = refs[base + 3][...]
    out_ref = refs[base + 4]

    # single fused head matmul: lanes [0:mean_width) = means, rest = logvars
    out = jnp.dot(h.astype(mm_dtype), w_head,
                  preferred_element_type=jnp.float32) + b_head

    # soft_clamp(logvar, min_logvar, max_logvar) on the logvar lanes only
    clamped = max_lv - _softplus(max_lv - out)
    clamped = min_lv + _softplus(clamped - min_lv)
    lane = jax.lax.broadcasted_iota(jnp.int32, out.shape, 1)
    out_ref[...] = jnp.where(lane >= mean_width, clamped, out)


# ------------------------ one-time parameter packing -----------------------


def _block_diag(w):
    """(E, in, out) -> block-diagonal (E*in, E*out). One-time, host/trace side."""
    e_, din, dout = w.shape
    out = jnp.zeros((e_ * din, e_ * dout), jnp.float32)
    for e in range(e_):
        out = out.at[e * din:(e + 1) * din, e * dout:(e + 1) * dout].set(
            w[e].astype(jnp.float32))
    return out


def pack_params(params, max_logvar, min_logvar):
    """Repack ensemble parameters into lane-packed kernel operands.

    Call ONCE when weights change; the result is passed to every forward call.
    params: list of (weight (E, in, out), bias (E, 1, out)); last entry is the
            output layer with out = 2 * (obs_dim + with_reward).
    """
    assert len(params) >= 2
    num_ensemble, d_in, _ = params[0][0].shape
    hidden_widths = [w.shape[-1] for w, _ in params[:-1]]
    final_out = params[-1][0].shape[-1]
    out_half = final_out // 2
    mean_width = num_ensemble * out_half
    total_out = 2 * mean_width
    num_hidden_layers = len(params) - 1

    # bf16 matmul operands only pay once per-member hidden reaches MXU size
    # (v6e/v7x bf16-native MXU; f32 accumulation is kept either way).
    use_bf16 = min(hidden_widths) >= 128
    mm_dtype = jnp.bfloat16 if use_bf16 else jnp.float32

    arrays = []
    # layer 0: input is shared across members -> (d_in, E*h0)
    w0, b0 = params[0]
    arrays.append(
        jnp.transpose(w0, (1, 0, 2)).reshape(d_in, -1).astype(mm_dtype))
    arrays.append(b0.reshape(1, -1).astype(jnp.float32))
    # remaining backbone layers: block-diagonal (E*h_prev, E*h)
    # TODO(synk): at production hidden sizes (e.g. 200 x 4 layers) this E^2
    # zero-fill blows VMEM/MXU; switch to grid=(E, B/tile_b) with per-member
    # dense (h, h) weights instead (each member is already lane-dense there).
    for w, b in params[1:-1]:
        arrays.append(_block_diag(w).astype(mm_dtype))
        arrays.append(b.reshape(1, -1).astype(jnp.float32))

    # fused output head: per member e, mean columns -> lanes [e*oh,(e+1)*oh),
    # logvar columns -> lanes [mean_width + e*oh, ...).  Single lane-dense slab.
    w_out, b_out = params[-1]
    h_last = w_out.shape[1]
    w_head = jnp.zeros((num_ensemble * h_last, total_out), jnp.float32)
    b_head = jnp.zeros((1, total_out), jnp.float32)
    for e in range(num_ensemble):
        rs = slice(e * h_last, (e + 1) * h_last)
        cm = slice(e * out_half, (e + 1) * out_half)
        cl = slice(mean_width + e * out_half, mean_width + (e + 1) * out_half)
        w_head = w_head.at[rs, cm].set(w_out[e, :, :out_half].astype(jnp.float32))
        w_head = w_head.at[rs, cl].set(w_out[e, :, out_half:].astype(jnp.float32))
        b_head = b_head.at[0, cm].set(b_out[e, 0, :out_half].astype(jnp.float32))
        b_head = b_head.at[0, cl].set(b_out[e, 0, out_half:].astype(jnp.float32))
    arrays.append(w_head.astype(mm_dtype))
    arrays.append(b_head)

    # logvar bounds live only in the logvar lanes; mean lanes are don't-care
    # (they are masked out with jnp.where in the kernel).
    max_packed = jnp.zeros((1, total_out), jnp.float32).at[0, mean_width:].set(
        jnp.tile(max_logvar.astype(jnp.float32), num_ensemble))
    min_packed = jnp.zeros((1, total_out), jnp.float32).at[0, mean_width:].set(
        jnp.tile(min_logvar.astype(jnp.float32), num_ensemble))
    arrays.append(max_packed)
    arrays.append(min_packed)

    return dict(
        arrays=tuple(arrays),
        num_ensemble=num_ensemble,
        out_half=out_half,
        num_hidden_layers=num_hidden_layers,
        mm_dtype=mm_dtype,
    )


# --------------------------- forward (hot path) -----------------------------


def ensemble_dynamics_forward(obs_action, packed, *, tile_b=512):
    """Pallas forward of EnsembleDynamicsModel.

    obs_action: (B, obs_dim + action_dim) float32
    packed:     output of pack_params()
    Returns (mean, logvar), each (E, B, obs_dim + with_reward).
    """
    arrays = packed["arrays"]
    num_ensemble = packed["num_ensemble"]
    out_half = packed["out_half"]
    num_hidden_layers = packed["num_hidden_layers"]
    mm_dtype = packed["mm_dtype"]
    mean_width = num_ensemble * out_half
    total_out = 2 * mean_width

    obs_action = obs_action.astype(jnp.float32)
    batch, d_in = obs_action.shape

    # batch tiling: sublane multiple of 8, up to tile_b rows per grid step
    batch8 = -(-batch // 8) * 8
    tb = max(8, min(tile_b, batch8))
    tb = -(-tb // 8) * 8
    grid_b = -(-batch8 // tb)
    batch_pad = grid_b * tb

    x = jnp.zeros((batch_pad, d_in), jnp.float32).at[:batch].set(obs_action)

    kernel = functools.partial(
        _ensemble_dynamics_kernel, num_hidden_layers, mean_width, mm_dtype)

    # x / output stream through the batch grid; weights (all 2-D, well under
    # the default 32 MiB scoped VMEM at these sizes) stay resident via constant
    # index_maps.  The "parallel" axis shards grid steps across both v7x TCs.
    x_spec = pl.BlockSpec((tb, d_in), lambda i: (i, 0))
    param_specs = [pl.BlockSpec(a.shape, lambda i: (0, 0)) for a in arrays]
    out_spec = pl.BlockSpec((tb, total_out), lambda i: (i, 0))

    out_p = pl.pallas_call(
        kernel,
        grid=(grid_b,),
        in_specs=[x_spec] + param_specs,
        out_specs=out_spec,
        out_shape=jax.ShapeDtypeStruct((batch_pad, total_out), jnp.float32),
        compiler_params=pltpu.CompilerParams(
            dimension_semantics=("parallel",)),
    )(x, *arrays)

    out = out_p[:batch]
    mean = jnp.transpose(
        out[:, :mean_width].reshape(batch, num_ensemble, out_half), (1, 0, 2))
    logvar = jnp.transpose(
        out[:, mean_width:].reshape(batch, num_ensemble, out_half), (1, 0, 2))
    # TODO(synk): reward_activation path (default None in the module) is not
    # implemented; mean is returned unmodified as in the default config.
    return mean, logvar


# ------------------------ deterministic param init ------------------------


def make_params(key, obs_dim, action_dim, hidden_dims, num_ensemble,
                with_reward=True):
    dims = [obs_dim + action_dim] + list(hidden_dims)
    params = []
    for in_dim, out_dim in zip(dims[:-1], dims[1:]):
        key, wk = jax.random.split(key)
        std = 1.0 / (2.0 * (in_dim ** 0.5))
        w = std * jax.random.truncated_normal(
            wk, -2.0, 2.0, (num_ensemble, in_dim, out_dim), jnp.float32)
        b = jnp.zeros((num_ensemble, 1, out_dim), jnp.float32)
        params.append((w, b))
    # output layer
    in_dim = dims[-1]
    out_dim = 2 * (obs_dim + int(with_reward))
    key, wk = jax.random.split(key)
    std = 1.0 / (2.0 * (in_dim ** 0.5))
    w = std * jax.random.truncated_normal(
        wk, -2.0, 2.0, (num_ensemble, in_dim, out_dim), jnp.float32)
    b = jnp.zeros((num_ensemble, 1, out_dim), jnp.float32)
    params.append((w, b))

    max_logvar = jnp.full((obs_dim + int(with_reward),), 0.5, jnp.float32)
    min_logvar = jnp.full((obs_dim + int(with_reward),), -10.0, jnp.float32)
    return params, max_logvar, min_logvar


# --------------------------- pure-JAX reference ----------------------------


def reference_forward(obs_action, params, max_logvar, min_logvar):
    out = obs_action[None].astype(jnp.float32)   # (1, B, D_in)
    for i, (w, b) in enumerate(params):
        out = jnp.einsum(
            "ebi,eio->ebo",
            jnp.broadcast_to(out, (w.shape[0],) + out.shape[1:]), w) + b
        if i < len(params) - 1:
            out = out * jax.nn.sigmoid(out)
    half = out.shape[-1] // 2
    mean, logvar = out[..., :half], out[..., half:]
    logvar = max_logvar - jax.nn.softplus(max_logvar - logvar)
    logvar = min_logvar + jax.nn.softplus(logvar - min_logvar)
    return mean, logvar


# --------------------------------- main -------------------------------------

if __name__ == "__main__":
    obs_dim, action_dim = 11, 3
    hidden_dims = (32, 32)
    num_ensemble = 7
    batch = 2

    key = jax.random.PRNGKey(0)
    pkey, xkey = jax.random.split(key)
    params, max_logvar, min_logvar = make_params(
        pkey, obs_dim, action_dim, hidden_dims, num_ensemble)

    obs_action = jax.random.normal(
        xkey, (batch, obs_dim + action_dim), jnp.float32)

    # one-time packing (hoisted out of the per-call forward path)
    packed = pack_params(params, max_logvar, min_logvar)
    packed = jax.tree_util.tree_map(
        lambda a: jax.block_until_ready(a) if isinstance(a, jax.Array) else a,
        packed)

    mean, logvar = ensemble_dynamics_forward(obs_action, packed)
    jax.block_until_ready((mean, logvar))

    ref_mean, ref_logvar = reference_forward(
        obs_action, params, max_logvar, min_logvar)
    assert mean.shape == ref_mean.shape and logvar.shape == ref_logvar.shape
    assert jnp.allclose(mean, ref_mean, atol=1e-4, rtol=1e-4)
    assert jnp.allclose(logvar, ref_logvar, atol=1e-4, rtol=1e-4)

    print("KERNEL_OK")
</pallas_src>

<mosaic_0001>
module attributes {stable_mosaic.version = 11 : i64} {
  func.func @_ensemble_dynamics_kernel(%arg0: i32, %arg1: memref<8x14xf32, #tpu.memory_space<vmem>>, %arg2: memref<14x224xf32, #tpu.memory_space<vmem>>, %arg3: memref<1x224xf32, #tpu.memory_space<vmem>>, %arg4: memref<224x224xf32, #tpu.memory_space<vmem>>, %arg5: memref<1x224xf32, #tpu.memory_space<vmem>>, %arg6: memref<224x168xf32, #tpu.memory_space<vmem>>, %arg7: memref<1x168xf32, #tpu.memory_space<vmem>>, %arg8: memref<1x168xf32, #tpu.memory_space<vmem>>, %arg9: memref<1x168xf32, #tpu.memory_space<vmem>>, %arg10: memref<8x168xf32, #tpu.memory_space<vmem>>) attributes {dimension_semantics = [#tpu.dimension_semantics<parallel>], iteration_bounds = array<i64: 1>, scalar_prefetch = 0 : i64, scratch_operands = 0 : i64, tpu.core_type = #tpu.core_type<tc>, window_params = [{transform_indices = @transform_0, window_bounds = array<i64: 8, 14>}, {pipeline_mode = #tpu.pipeline_mode<synchronous>, transform_indices = @transform_1, window_bounds = array<i64: 14, 224>}, {pipeline_mode = #tpu.pipeline_mode<synchronous>, transform_indices = @transform_2, window_bounds = array<i64: 1, 224>}, {pipeline_mode = #tpu.pipeline_mode<synchronous>, transform_indices = @transform_3, window_bounds = array<i64: 224, 224>}, {pipeline_mode = #tpu.pipeline_mode<synchronous>, transform_indices = @transform_4, window_bounds = array<i64: 1, 224>}, {pipeline_mode = #tpu.pipeline_mode<synchronous>, transform_indices = @transform_5, window_bounds = array<i64: 224, 168>}, {pipeline_mode = #tpu.pipeline_mode<synchronous>, transform_indices = @transform_6, window_bounds = array<i64: 1, 168>}, {pipeline_mode = #tpu.pipeline_mode<synchronous>, transform_indices = @transform_7, window_bounds = array<i64: 1, 168>}, {pipeline_mode = #tpu.pipeline_mode<synchronous>, transform_indices = @transform_8, window_bounds = array<i64: 1, 168>}, {transform_indices = @transform_9, window_bounds = array<i64: 8, 168>}]} {
    %c0 = arith.constant 0 : index
    %c0_0 = arith.constant 0 : index
    %0 = vector.load %arg1[%c0, %c0_0] : memref<8x14xf32, #tpu.memory_space<vmem>>, vector<8x14xf32>
    %c0_1 = arith.constant 0 : index
    %c0_2 = arith.constant 0 : index
    %1 = vector.load %arg2[%c0_1, %c0_2] : memref<14x224xf32, #tpu.memory_space<vmem>>, vector<14x224xf32>
    %c0_3 = arith.constant 0 : index
    %c0_4 = arith.constant 0 : index
    %2 = vector.load %arg3[%c0_3, %c0_4] : memref<1x224xf32, #tpu.memory_space<vmem>>, vector<1x224xf32>
    %cst = arith.constant dense<0.000000e+00> : vector<8x224xf32>
    %3 = tpu.matmul %0, %1, %cst {dimension_numbers = #tpu.dot_dimension_numbers<[1], [0], [0], [1], [0, 0, 1, 1], [], []>} : vector<8x14xf32>, vector<14x224xf32>, vector<8x224xf32> -> vector<8x224xf32>
    %4 = vector.broadcast %2 : vector<1x224xf32> to vector<8x224xf32>
    %5 = arith.addf %3, %4 : vector<8x224xf32>
    %6 = arith.negf %5 : vector<8x224xf32>
    %7 = math.exp %6 : vector<8x224xf32>
    %cst_5 = arith.constant 1.000000e+00 : f32
    %8 = vector.broadcast %cst_5 : f32 to vector<8x224xf32>
    %9 = arith.addf %8, %7 : vector<8x224xf32>
    %10 = arith.divf %8, %9 : vector<8x224xf32>
    %11 = arith.mulf %5, %10 : vector<8x224xf32>
    %c0_6 = arith.constant 0 : index
    %c0_7 = arith.constant 0 : index
    %12 = vector.load %arg4[%c0_6, %c0_7] : memref<224x224xf32, #tpu.memory_space<vmem>>, vector<224x224xf32>
    %c0_8 = arith.constant 0 : index
    %c0_9 = arith.constant 0 : index
    %13 = vector.load %arg5[%c0_8, %c0_9] : memref<1x224xf32, #tpu.memory_space<vmem>>, vector<1x224xf32>
    %cst_10 = arith.constant dense<0.000000e+00> : vector<8x224xf32>
    %14 = tpu.matmul %11, %12, %cst_10 {dimension_numbers = #tpu.dot_dimension_numbers<[1], [0], [0], [1], [0, 0, 1, 1], [], []>} : vector<8x224xf32>, vector<224x224xf32>, vector<8x224xf32> -> vector<8x224xf32>
    %15 = vector.broadcast %13 : vector<1x224xf32> to vector<8x224xf32>
    %16 = arith.addf %14, %15 : vector<8x224xf32>
    %17 = arith.negf %16 : vector<8x224xf32>
    %18 = math.exp %17 : vector<8x224xf32>
    %cst_11 = arith.constant 1.000000e+00 : f32
    %19 = vector.broadcast %cst_11 : f32 to vector<8x224xf32>
    %20 = arith.addf %19, %18 : vector<8x224xf32>
    %21 = arith.divf %19, %20 : vector<8x224xf32>
    %22 = arith.mulf %16, %21 : vector<8x224xf32>
    %c0_12 = arith.constant 0 : index
    %c0_13 = arith.constant 0 : index
    %23 = vector.load %arg6[%c0_12, %c0_13] : memref<224x168xf32, #tpu.memory_space<vmem>>, vector<224x168xf32>
    %c0_14 = arith.constant 0 : index
    %c0_15 = arith.constant 0 : index
    %24 = vector.load %arg7[%c0_14, %c0_15] : memref<1x168xf32, #tpu.memory_space<vmem>>, vector<1x168xf32>
    %c0_16 = arith.constant 0 : index
    %c0_17 = arith.constant 0 : index
    %25 = vector.load %arg8[%c0_16, %c0_17] : memref<1x168xf32, #tpu.memory_space<vmem>>, vector<1x168xf32>
    %c0_18 = arith.constant 0 : index
    %c0_19 = arith.constant 0 : index
    %26 = vector.load %arg9[%c0_18, %c0_19] : memref<1x168xf32, #tpu.memory_space<vmem>>, vector<1x168xf32>
    %cst_20 = arith.constant dense<0.000000e+00> : vector<8x168xf32>
    %27 = tpu.matmul %22, %23, %cst_20 {dimension_numbers = #tpu.dot_dimension_numbers<[1], [0], [0], [1], [0, 0, 1, 1], [], []>} : vector<8x224xf32>, vector<224x168xf32>, vector<8x168xf32> -> vector<8x168xf32>
    %28 = vector.broadcast %24 : vector<1x168xf32> to vector<8x168xf32>
    %29 = arith.addf %27, %28 : vector<8x168xf32>
    %30 = vector.broadcast %25 : vector<1x168xf32> to vector<8x168xf32>
    %31 = arith.subf %30, %29 : vector<8x168xf32>
    %cst_21 = arith.constant 0.000000e+00 : f32
    %32 = vector.broadcast %cst_21 : f32 to vector<8x168xf32>
    %33 = arith.maximumf %31, %32 : vector<8x168xf32>
    %34 = vector.broadcast %cst_21 : f32 to vector<8x168xf32>
    %35 = arith.subf %31, %34 : vector<8x168xf32>
    %36 = arith.cmpf one, %35, %35 : vector<8x168xf32>
    %37 = vector.broadcast %cst_21 : f32 to vector<8x168xf32>
    %38 = arith.addf %31, %37 : vector<8x168xf32>
    %39 = math.absf %35 : vector<8x168xf32>
    %cst_22 = arith.constant 0.000000e+00 : f32
    %40 = vector.broadcast %cst_22 : f32 to vector<8x168xf32>
    %41 = arith.subf %40, %39 : vector<8x168xf32>
    %42 = math.exp %41 : vector<8x168xf32>
    %43 = math.log1p %42 : vector<8x168xf32>
    %44 = arith.addf %33, %43 : vector<8x168xf32>
    %45 = arith.select %36, %38, %44 : vector<8x168xi1>, vector<8x168xf32>
    %46 = vector.broadcast %25 : vector<1x168xf32> to vector<8x168xf32>
    %47 = arith.subf %46, %45 : vector<8x168xf32>
    %48 = vector.broadcast %26 : vector<1x168xf32> to vector<8x168xf32>
    %49 = arith.subf %47, %48 : vector<8x168xf32>
    %cst_23 = arith.constant 0.000000e+00 : f32
    %50 = vector.broadcast %cst_23 : f32 to vector<8x168xf32>
    %51 = arith.maximumf %49, %50 : vector<8x168xf32>
    %52 = vector.broadcast %cst_23 : f32 to vector<8x168xf32>
    %53 = arith.subf %49, %52 : vector<8x168xf32>
    %54 = arith.cmpf one, %53, %53 : vector<8x168xf32>
    %55 = vector.broadcast %cst_23 : f32 to vector<8x168xf32>
    %56 = arith.addf %49, %55 : vector<8x168xf32>
    %57 = math.absf %53 : vector<8x168xf32>
    %cst_24 = arith.constant 0.000000e+00 : f32
    %58 = vector.broadcast %cst_24 : f32 to vector<8x168xf32>
    %59 = arith.subf %58, %57 : vector<8x168xf32>
    %60 = math.exp %59 : vector<8x168xf32>
    %61 = math.log1p %60 : vector<8x168xf32>
    %62 = arith.addf %51, %61 : vector<8x168xf32>
    %63 = arith.select %54, %56, %62 : vector<8x168xi1>, vector<8x168xf32>
    %64 = vector.broadcast %26 : vector<1x168xf32> to vector<8x168xf32>
    %65 = arith.addf %64, %63 : vector<8x168xf32>
    %66 = tpu.iota {dimensions = array<i32: 1>} : vector<8x168xi32>
    %c84_i32 = arith.constant 84 : i32
    %67 = vector.broadcast %c84_i32 : i32 to vector<8x168xi32>
    %68 = arith.cmpi sge, %66, %67 : vector<8x168xi32>
    %69 = arith.select %68, %65, %29 : vector<8x168xi1>, vector<8x168xf32>
    %c0_25 = arith.constant 0 : index
    %c0_26 = arith.constant 0 : index
    %70 = vector.load %arg10[%c0_25, %c0_26] : memref<8x168xf32, #tpu.memory_space<vmem>>, vector<8x168xf32>
    tpu.vector_store %arg10[%c0_25, %c0_26], %69 {strides = array<i32>} : memref<8x168xf32, #tpu.memory_space<vmem>>, vector<8x168xf32>,
    return
  }
  func.func @transform_0(%arg0: i32) -> (i32, i32) {
    %c0_i32 = arith.constant 0 : i32
    %c0_i32_0 = arith.constant 0 : i32
    return %arg0, %c0_i32 : i32, i32
  }
  func.func @transform_1(%arg0: i32) -> (i32, i32) {
    %c0_i32 = arith.constant 0 : i32
    %c0_i32_0 = arith.constant 0 : i32
    %c0_i32_1 = arith.constant 0 : i32
    return %c0_i32, %c0_i32_0 : i32, i32
  }
  func.func @transform_2(%arg0: i32) -> (i32, i32) {
    %c0_i32 = arith.constant 0 : i32
    %c0_i32_0 = arith.constant 0 : i32
    %c0_i32_1 = arith.constant 0 : i32
    return %c0_i32, %c0_i32_0 : i32, i32
  }
  func.func @transform_3(%arg0: i32) -> (i32, i32) {
    %c0_i32 = arith.constant 0 : i32
    %c0_i32_0 = arith.constant 0 : i32
    %c0_i32_1 = arith.constant 0 : i32
    return %c0_i32, %c0_i32_0 : i32, i32
  }
  func.func @transform_4(%arg0: i32) -> (i32, i32) {
    %c0_i32 = arith.constant 0 : i32
    %c0_i32_0 = arith.constant 0 : i32
    %c0_i32_1 = arith.constant 0 : i32
    return %c0_i32, %c0_i32_0 : i32, i32
  }
  func.func @transform_5(%arg0: i32) -> (i32, i32) {
    %c0_i32 = arith.constant 0 : i32
    %c0_i32_0 = arith.constant 0 : i32
    %c0_i32_1 = arith.constant 0 : i32
    return %c0_i32, %c0_i32_0 : i32, i32
  }
  func.func @transform_6(%arg0: i32) -> (i32, i32) {
    %c0_i32 = arith.constant 0 : i32
    %c0_i32_0 = arith.constant 0 : i32
    %c0_i32_1 = arith.constant 0 : i32
    return %c0_i32, %c0_i32_0 : i32, i32
  }
  func.func @transform_7(%arg0: i32) -> (i32, i32) {
    %c0_i32 = arith.constant 0 : i32
    %c0_i32_0 = arith.constant 0 : i32
    %c0_i32_1 = arith.constant 0 : i32
    return %c0_i32, %c0_i32_0 : i32, i32
  }
  func.func @transform_8(%arg0: i32) -> (i32, i32) {
    %c0_i32 = arith.constant 0 : i32
    %c0_i32_0 = arith.constant 0 : i32
    %c0_i32_1 = arith.constant 0 : i32
    return %c0_i32, %c0_i32_0 : i32, i32
  }
  func.func @transform_9(%arg0: i32) -> (i32, i32) {
    %c0_i32 = arith.constant 0 : i32
    %c0_i32_0 = arith.constant 0 : i32
    return %arg0, %c0_i32 : i32, i32
  }
}

</mosaic_0001>

<bundles_post_ra>
// kernel: tpu_custom_call.1
= control target key start
LH: loop header
LB: loop body
LE: loop exit
PB: predicated region body
PF: predicated region fallthrough
CT: control target
= control target key end

     0   :  { %vm54_vm0 = vcmask 1045504   ;;  %vm759_vm1 = vmmov 1   ;;  %v760_v6 = vmov 0.0   ;;  %vm50_vm3 = vcmask 113664   ;;  %s1212_s0 = inlined_call_operand.vmem [shape: f32[8,14], index: 0, kind: input, shape index: {}]   ;;  %s1213_s1 = inlined_call_operand.vmem [shape: f32[14,224], index: 1, kind: input, shape index: {}]   ;;  %s1214_s2 = inlined_call_operand.vmem [shape: f32[1,224], index: 2, kind: input, shape index: {}]   ;;  %s1215_s3 = inlined_call_operand.vmem [shape: f32[224,224], index: 3, kind: input, shape index: {}]   ;;  %s1216_s4 = inlined_call_operand.vmem [shape: f32[1,224], index: 4, kind: input, shape index: {}]   ;;  %s1217_s5 = inlined_call_operand.vmem [shape: f32[224,168], index: 5, kind: input, shape index: {}]   ;;  %s1218_s6 = inlined_call_operand.vmem [shape: f32[1,168], index: 6, kind: input, shape index: {}]   ;;  %s1219_s7 = inlined_call_operand.vmem [shape: f32[1,168], index: 7, kind: input, shape index: {}]   ;;  %s1220_s8 = inlined_call_operand.vmem [shape: f32[1,168], index: 8, kind: input, shape index: {}]   ;;  %s1221_s9 = inlined_call_operand.hbm [shape: f32[8,168], index: 9, kind: output, shape index: {}]  }
   0x1   :  { %v35_v0 = vld [vmem:[%s1213_s1 + $0x8] sm:$0xff]  ;;  %v37_v1 = vld [vmem:[%s1213_s1 + $0x18] sm:$0x3f]  ;;  %v34_v2 = vld [vmem:[%s1213_s1] sm:$0xff]  ;;  %125 = vmatprep.mubr.f32.mxu0 %v760_v6 }
   0x2   :  { %v582_v3 = vpack.c.bf16 %v37_v1, %v35_v0  ;;  %vm583_vm2 = vmpackc.low %vm54_vm0, %vm759_vm1  ;;  %v36_v4 = vld [vmem:[%s1213_s1 + $0x10] sm:$0x3f]  ;;  %v33_v7 = vld [vmem:[%s1212_s0] sm:$0xff] }
   0x3   :  { %v585_v5 = vpack.c.bf16 %v36_v4, %v34_v2  ;;  %v147_v8 = vld [vmem:[%s1215_s3 + $0x8] sm:$0xff]  ;;  %v149_v9 = vld [vmem:[%s1215_s3 + $0x18] sm:$0xff]  ;;  %v146_v10 = vld [vmem:[%s1215_s3] sm:$0xff] }
   0x4   :  { %584 = vmatprep.subr.msk.bf16.mxu0 %vm583_vm2, %v582_v3  ;;  %v588_v11 = vpack.c.bf16 %v149_v9, %v147_v8  ;;  %v148_v12 = vld [vmem:[%s1215_s3 + $0x10] sm:$0xff]  ;;  %v151_v13 = vld [vmem:[%s1215_s3 + $0x28] sm:$0xff]  ;;  %v153_v14 = vld [vmem:[%s1215_s3 + $0x38] sm:$0xff] }
   0x5   :  { %587 = vmatpush1.bf16.msk.msra.mxu0 %vm583_vm2, %v585_v5  ;;  %v590_v15 = vpack.c.bf16 %v148_v12, %v146_v10  ;;  %v592_v16 = vpack.c.bf16 %v153_v14, %v151_v13  ;;  %v150_v17 = vld [vmem:[%s1215_s3 + $0x20] sm:$0xff]  ;;  %v152_v18 = vld [vmem:[%s1215_s3 + $0x30] sm:$0xff]  ;;  %v155_v19 = vld [vmem:[%s1215_s3 + $0x48] sm:$0xff] }
   0x6   :  { %589 = vmatprep.subr.bf16.mxu1 %v588_v11  ;;  %v157_v20 = vld [vmem:[%s1215_s3 + $0x58] sm:$0xff]  ;;  %v594_v21 = vpack.c.bf16 %v152_v18, %v150_v17  ;;  %v154_v23 = vld [vmem:[%s1215_s3 + $0x40] sm:$0xff]  ;;  %v156_v24 = vld [vmem:[%s1215_s3 + $0x50] sm:$0xff] }
   0x7   :  { %591 = vmatpush1.bf16.msra.mxu1 %v590_v15  ;;  %v596_v22 = vpack.c.bf16 %v157_v20, %v155_v19  ;;  %v159_v25 = vld [vmem:[%s1215_s3 + $0x68] sm:$0xff]  ;;  %v161_v26 = vld [vmem:[%s1215_s3 + $0x78] sm:$0xff]  ;;  %v598_v27 = vpack.c.bf16 %v156_v24, %v154_v23 }
   0x8   :  { %575 = vmatmul.mubr.msk.f32.vlgmr.msra.gmra.mrb[0].mxu0 %vm50_vm3, %v33_v7  ;;  %593 = vmatprep.subr.bf16.mxu1 %v592_v16 }
   0xb   :  { %595 = vmatpush1.bf16.msra.mxu1 %v594_v21 }
   0xc   :  { %14 = vsyncpa [#allocation3], 0  ;;  %597 = vmatprep.subr.bf16.mxu1 %v596_v22  ;;  %v600_v28 = vpack.c.bf16 %v161_v26, %v159_v25  ;;  %v158_v29 = vld [vmem:[%s1215_s3 + $0x60] sm:$0xff]  ;;  %v160_v30 = vld [vmem:[%s1215_s3 + $0x70] sm:$0xff]  ;;  %vm214_vm4 = vcmask 785408   ;;  %vm557_vm14 = vcmask 326656  }
   0xd   :  { %v163_v31 = vld [vmem:[%s1215_s3 + $0x88] sm:$0xff]  ;;  %v165_v32 = vld [vmem:[%s1215_s3 + $0x98] sm:$0xff]  ;;  %v602_v33 = vpack.c.bf16 %v160_v30, %v158_v29  ;;  %v162_v35 = vld [vmem:[%s1215_s3 + $0x80] sm:$0xff] }
   0xe   :  { %v604_v34 = vpack.c.bf16 %v165_v32, %v163_v31  ;;  %v164_v36 = vld [vmem:[%s1215_s3 + $0x90] sm:$0xff]  ;;  %v167_v37 = vld [vmem:[%s1215_s3 + $0xa8] sm:$0xff]  ;;  %v169_v38 = vld [vmem:[%s1215_s3 + $0xb8] sm:$0xff] }
   0xf   :  { %599 = vmatpush1.bf16.msra.mxu1 %v598_v27  ;;  %v606_v39 = vpack.c.bf16 %v164_v36, %v162_v35  ;;  %v608_v40 = vpack.c.bf16 %v169_v38, %v167_v37  ;;  %v166_v41 = vld [vmem:[%s1215_s3 + $0xa0] sm:$0xff]  ;;  %v168_v42 = vld [vmem:[%s1215_s3 + $0xb0] sm:$0xff]  ;;  %v171_v44 = vld [vmem:[%s1215_s3 + $0xc8] sm:$0xff] }
  0x10   :  { %601 = vmatprep.subr.bf16.mxu1 %v600_v28  ;;  %v610_v43 = vpack.c.bf16 %v168_v42, %v166_v41  ;;  %v173_v45 = vld [vmem:[%s1215_s3 + $0xd8] sm:$0xff]  ;;  %v170_v47 = vld [vmem:[%s1215_s3 + $0xc0] sm:$0xff]  ;;  %v172_v48 = vld [vmem:[%s1215_s3 + $0xd0] sm:$0xff] }
  0x11   :  { %v612_v46 = vpack.c.bf16 %v173_v45, %v171_v44  ;;  %v614_v49 = vpack.c.bf16 %v172_v48, %v170_v47  ;;  %v175_v50 = vld [vmem:[%s1215_s3 + $0xe8] sm:$0xff]  ;;  %v177_v51 = vld [vmem:[%s1215_s3 + $0xf8] sm:$0xff]  ;;  %v174_v53 = vld [vmem:[%s1215_s3 + $0xe0] sm:$0xff] }
  0x12   :  { %v616_v52 = vpack.c.bf16 %v177_v51, %v175_v50  ;;  %v176_v54 = vld [vmem:[%s1215_s3 + $0xf0] sm:$0xff]  ;;  %v179_v56 = vld [vmem:[%s1215_s3 + $0x108] sm:$0xff]  ;;  %v181_v57 = vld [vmem:[%s1215_s3 + $0x118] sm:$0xff] }
  0x13   :  { %603 = vmatpush1.bf16.msra.mxu1 %v602_v33  ;;  %v618_v55 = vpack.c.bf16 %v176_v54, %v174_v53  ;;  %v620_v58 = vpack.c.bf16 %v181_v57, %v179_v56  ;;  %v178_v59 = vld [vmem:[%s1215_s3 + $0x100] sm:$0xff]  ;;  %v180_v60 = vld [vmem:[%s1215_s3 + $0x110] sm:$0xff]  ;;  %v183_v62 = vld [vmem:[%s1215_s3 + $0x128] sm:$0xff] }
  0x14   :  { %605 = vmatprep.subr.bf16.mxu1 %v604_v34  ;;  %v622_v61 = vpack.c.bf16 %v180_v60, %v178_v59  ;;  %v185_v63 = vld [vmem:[%s1215_s3 + $0x138] sm:$0xff]  ;;  %v182_v1 = vld [vmem:[%s1215_s3 + $0x120] sm:$0xff]  ;;  %v184_v2 = vld [vmem:[%s1215_s3 + $0x130] sm:$0xff] }
  0x15   :  { %v624_v0 = vpack.c.bf16 %v185_v63, %v183_v62  ;;  %v626_v3 = vpack.c.bf16 %v184_v2, %v182_v1  ;;  %v187_v4 = vld [vmem:[%s1215_s3 + $0x148] sm:$0xff]  ;;  %v189_v5 = vld [vmem:[%s1215_s3 + $0x158] sm:$0xff]  ;;  %v186_v7 = vld [vmem:[%s1215_s3 + $0x140] sm:$0xff] }
  0x16   :  { %v628_v6 = vpack.c.bf16 %v189_v5, %v187_v4  ;;  %v188_v8 = vld [vmem:[%s1215_s3 + $0x150] sm:$0xff]  ;;  %v191_v10 = vld [vmem:[%s1215_s3 + $0x168] sm:$0xff]  ;;  %v193_v11 = vld [vmem:[%s1215_s3 + $0x178] sm:$0xff] }
  0x17   :  { %607 = vmatpush1.bf16.msra.mxu1 %v606_v39  ;;  %v630_v9 = vpack.c.bf16 %v188_v8, %v186_v7  ;;  %v632_v12 = vpack.c.bf16 %v193_v11, %v191_v10  ;;  %v190_v13 = vld [vmem:[%s1215_s3 + $0x160] sm:$0xff]  ;;  %v192_v14 = vld [vmem:[%s1215_s3 + $0x170] sm:$0xff]  ;;  %v195_v16 = vld [vmem:[%s1215_s3 + $0x188] sm:$0xff] }
  0x18   :  { %609 = vmatprep.subr.bf16.mxu1 %v608_v40  ;;  %v634_v15 = vpack.c.bf16 %v192_v14, %v190_v13  ;;  %v197_v17 = vld [vmem:[%s1215_s3 + $0x198] sm:$0xff]  ;;  %v194_v19 = vld [vmem:[%s1215_s3 + $0x180] sm:$0xff]  ;;  %v196_v20 = vld [vmem:[%s1215_s3 + $0x190] sm:$0xff] }
  0x19   :  { %v636_v18 = vpack.c.bf16 %v197_v17, %v195_v16  ;;  %v638_v21 = vpack.c.bf16 %v196_v20, %v194_v19  ;;  %v199_v22 = vld [vmem:[%s1215_s3 + $0x1a8] sm:$0xff]  ;;  %v201_v23 = vld [vmem:[%s1215_s3 + $0x1b8] sm:$0xff]  ;;  %v198_v25 = vld [vmem:[%s1215_s3 + $0x1a0] sm:$0xff] }
  0x1a   :  { %v640_v24 = vpack.c.bf16 %v201_v23, %v199_v22  ;;  %v200_v26 = vld [vmem:[%s1215_s3 + $0x1b0] sm:$0xff]  ;;  %v304_v28 = vld [vmem:[%s1217_s5 + $0x8] sm:$0xff]  ;;  %v306_v29 = vld [vmem:[%s1217_s5 + $0x18] sm:$0xff] }
  0x1b   :  { %611 = vmatpush1.bf16.msra.mxu1 %v610_v43  ;;  %v642_v27 = vpack.c.bf16 %v200_v26, %v198_v25  ;;  %v303_v30 = vld [vmem:[%s1217_s5] sm:$0xff]  ;;  %v644_v31 = vpack.c.bf16 %v306_v29, %v304_v28  ;;  %v305_v32 = vld [vmem:[%s1217_s5 + $0x10] sm:$0xff]  ;;  %v308_v33 = vld [vmem:[%s1217_s5 + $0x28] sm:$0xff] }
  0x1c   :  { %613 = vmatprep.subr.bf16.mxu1 %v612_v46  ;;  %v310_v34 = vld [vmem:[%s1217_s5 + $0x38] sm:$0xff]  ;;  %v646_v35 = vpack.c.bf16 %v305_v32, %v303_v30  ;;  %v307_v37 = vld [vmem:[%s1217_s5 + $0x20] sm:$0xff]  ;;  %v309_v38 = vld [vmem:[%s1217_s5 + $0x30] sm:$0xff] }
  0x1d   :  { %v648_v36 = vpack.c.bf16 %v310_v34, %v308_v33  ;;  %v312_v39 = vld [vmem:[%s1217_s5 + $0x48] sm:$0xff]  ;;  %645 = vmatprep.subr.bf16.mxu0 %v644_v31  ;;  %v314_v40 = vld [vmem:[%s1217_s5 + $0x58] sm:$0xff]  ;;  %v650_v41 = vpack.c.bf16 %v309_v38, %v307_v37  ;;  %v311_v43 = vld [vmem:[%s1217_s5 + $0x40] sm:$0xff] }
  0x1e   :  { %647 = vmatpush1.bf16.msra.mxu0 %v646_v35  ;;  %v652_v42 = vpack.c.bf16 %v314_v40, %v312_v39  ;;  %v313_v44 = vld [vmem:[%s1217_s5 + $0x50] sm:$0xff]  ;;  %v316_v45 = vld [vmem:[%s1217_s5 + $0x68] sm:$0xff]  ;;  %v318_v46 = vld [vmem:[%s1217_s5 + $0x78] sm:$0xff] }
  0x1f   :  { %615 = vmatpush1.bf16.msra.mxu1 %v614_v49  ;;  %649 = vmatprep.subr.bf16.mxu0 %v648_v36  ;;  %v654_v47 = vpack.c.bf16 %v313_v44, %v311_v43  ;;  %v656_v48 = vpack.c.bf16 %v318_v46, %v316_v45  ;;  %v315_v49 = vld [vmem:[%s1217_s5 + $0x60] sm:$0xff]  ;;  %v317_v50 = vld [vmem:[%s1217_s5 + $0x70] sm:$0xff]  ;;  %v320_v51 = vld [vmem:[%s1217_s5 + $0x88] sm:$0xff] }
  0x20   :  { %617 = vmatprep.subr.bf16.mxu1 %v616_v52  ;;  %v322_v52 = vld [vmem:[%s1217_s5 + $0x98] sm:$0xff]  ;;  %v658_v53 = vpack.c.bf16 %v317_v50, %v315_v49  ;;  %v321_v56 = vld [vmem:[%s1217_s5 + $0x90] sm:$0xff]  ;;  %v324_v57 = vld [vmem:[%s1217_s5 + $0xa8] sm:$0xff] }
  0x21   :  { %v660_v54 = vpack.c.bf16 %v322_v52, %v320_v51  ;;  %v325_v62 = vld [vmem:[%s1217_s5 + $0xb0] sm:$0xff]  ;;  %v330_v22 = vld [vmem:[%s1217_s5 + $0xd8] sm:$0xff]  ;;  %v331_v30 = vld [vmem:[%s1217_s5 + $0xe0] sm:$0xff] }
  0x22   :  { %651 = vmatpush1.bf16.msra.mxu0 %v650_v41  ;;  %v329_v25 = vld [vmem:[%s1217_s5 + $0xd0] sm:$0xff]  ;;  %v334_v28 = vld [vmem:[%s1217_s5 + $0xf8] sm:$0xff]  ;;  %v336_v33 = vld [vmem:[%s1217_s5 + $0x108] sm:$0xff] }
  0x23   :  { %619 = vmatpush1.bf16.msra.mxu1 %v618_v55  ;;  %653 = vmatprep.subr.bf16.mxu0 %v652_v42  ;;  %v319_v55 = vld [vmem:[%s1217_s5 + $0x80] sm:$0xff]  ;;  %v333_v31 = vld [vmem:[%s1217_s5 + $0xf0] sm:$0xff]  ;;  %v338_v34 = vld [vmem:[%s1217_s5 + $0x118] sm:$0xff] }
  0x24   :  { %621 = vmatprep.subr.bf16.mxu1 %v620_v58  ;;  %v326_v58 = vld [vmem:[%s1217_s5 + $0xb8] sm:$0xff]  ;;  %v662_v59 = vpack.c.bf16 %v321_v56, %v319_v55  ;;  %v674_v32 = vpack.c.bf16 %v333_v31, %v331_v30  ;;  %v676_v35 = vpack.c.bf16 %v338_v34, %v336_v33  ;;  %v335_v36 = vld [vmem:[%s1217_s5 + $0x100] sm:$0xff]  ;;  %v337_v37 = vld [vmem:[%s1217_s5 + $0x110] sm:$0xff] }
  0x25   :  { %v664_v60 = vpack.c.bf16 %v326_v58, %v324_v57  ;;  %v678_v38 = vpack.c.bf16 %v337_v37, %v335_v36  ;;  %v340_v39 = vld [vmem:[%s1217_s5 + $0x128] sm:$0xff]  ;;  %v342_v40 = vld [vmem:[%s1217_s5 + $0x138] sm:$0xff]  ;;  %v339_v42 = vld [vmem:[%s1217_s5 + $0x120] sm:$0xff] }
  0x26   :  { %655 = vmatpush1.bf16.msra.mxu0 %v654_v47  ;;  %v680_v41 = vpack.c.bf16 %v342_v40, %v340_v39  ;;  %v341_v43 = vld [vmem:[%s1217_s5 + $0x130] sm:$0xff]  ;;  %v344_v45 = vld [vmem:[%s1217_s5 + $0x148] sm:$0xff]  ;;  %v346_v46 = vld [vmem:[%s1217_s5 + $0x158] sm:$0xff] }
  0x27   :  { %623 = vmatpush1.bf16.msra.mxu1 %v622_v61  ;;  %657 = vmatprep.subr.bf16.mxu0 %v656_v48  ;;  %v323_v61 = vld [vmem:[%s1217_s5 + $0xa0] sm:$0xff]  ;;  %v682_v44 = vpack.c.bf16 %v341_v43, %v339_v42  ;;  %v684_v47 = vpack.c.bf16 %v346_v46, %v344_v45  ;;  %v345_v49 = vld [vmem:[%s1217_s5 + $0x150] sm:$0xff]  ;;  %v348_v51 = vld [vmem:[%s1217_s5 + $0x168] sm:$0xff] }
  0x28   :  { %625 = vmatprep.subr.bf16.mxu1 %v624_v0  ;;  %v666_v63 = vpack.c.bf16 %v325_v62, %v323_v61  ;;  %v40_v0 = vlaneseq  ;;  %v343_v48 = vld [vmem:[%s1217_s5 + $0x140] sm:$0xff]  ;;  %v350_v52 = vld [vmem:[%s1217_s5 + $0x178] sm:$0xff]  ;;  %v349_v55 = vld [vmem:[%s1217_s5 + $0x170] sm:$0xff] }
  0x29   :  { %v686_v50 = vpack.c.bf16 %v345_v49, %v343_v48  ;;  %v352_v57 = vld [vmem:[%s1217_s5 + $0x188] sm:$0xff]  ;;  %v354_v58 = vld [vmem:[%s1217_s5 + $0x198] sm:$0xff]  ;;  %v353_v61 = vld [vmem:[%s1217_s5 + $0x190] sm:$0xff] }
  0x2a   :  { %659 = vmatpush1.bf16.msra.mxu0 %v658_v53  ;;  %v41_v1 = vshrl.u32 %v40_v0, 7  ;;  %v688_v53 = vpack.c.bf16 %v350_v52, %v348_v51 }
  0x2b   :  { %627 = vmatpush1.bf16.msra.mxu1 %v626_v3  ;;  %661 = vmatprep.subr.bf16.mxu0 %v660_v54  ;;  %v38_v3 = vld [vmem:[%s1214_s2] sm:$0x3] }
  0x2c   :  { %629 = vmatprep.subr.bf16.mxu1 %v628_v6  ;;  %v1068_v2 = vsub.s32 0, %v41_v1  ;;  %v1073_v4 = vsub.s32 1, %v41_v1  ;;  %v347_v54 = vld [vmem:[%s1217_s5 + $0x160] sm:$0xff]  ;;  %v358_v1 = vld [vmem:[%s1217_s5 + $0x1b8] sm:$0xff] }
  0x2d   :  { %v690_v56 = vpack.c.bf16 %v349_v55, %v347_v54  ;;  %v361_v55 = vld [vmem:[%s1220_s8] sm:$0x3]  ;;  %s761_s8 = smov [#allocation2]  }
  0x2e   :  { %663 = vmatpush1.bf16.msra.mxu0 %v662_v59  ;;  %v43_v5 = vrot.slane %v38_v3, %v1068_v2  ;;  %v47_v6 = vrot.slane %v38_v3, %v1073_v4  ;;  %v692_v59 = vpack.c.bf16 %v354_v58, %v352_v57  ;;  %s565_s11 = sshll.u32 %s761_s8, 4  ;;  %s566_s11 = int_to_ptr.vmem [resolvable:$true] %s565_s11 }
  0x2f   :  { %631 = vmatpush1.bf16.msra.mxu1 %v630_v9  ;;  %665 = vmatprep.subr.bf16.mxu0 %v664_v60  ;;  %v351_v60 = vld [vmem:[%s1217_s5 + $0x180] sm:$0xff]  ;;  %s735_s12 = scalar_lea.vmem %s566_s11, 256  ;;  %p740_p1 = scmp.lt.s32.totalorder %s566_s11, %s566_s11 }
  0x30   :  { %633 = vmatprep.subr.bf16.mxu1 %v632_v12  ;;  %v694_v62 = vpack.c.bf16 %v353_v61, %v351_v60  ;;  %p736_p0 = scmp.ne.s32.totalorder %s566_s11, %s735_s12  ;;  %p741_p2 = scmp.lt.s32.totalorder %s735_s12, %s735_s12 }
  0x32   :  { %667 = vmatpush1.bf16.msra.mxu0 %v666_v63  ;;  %v356_v63 = vld [vmem:[%s1217_s5 + $0x1a8] sm:$0xff]  ;;  %p742_p3 = por %p741_p2, %p740_p1 }
  0x33   :  { %635 = vmatpush1.bf16.msra.mxu1 %v634_v15  ;;  %v696_v3 = vpack.c.bf16 %v358_v1, %v356_v63 }
  0x34   :  { %637 = vmatprep.subr.bf16.mxu1 %v636_v18  ;;  %p743_p4 = pnand %p742_p3, %p736_p0 }
  0x37   :  { %639 = vmatpush1.bf16.msra.mxu1 %v638_v21  ;;  %v328_v21 = vld [vmem:[%s1217_s5 + $0xc8] sm:$0xff] }
  0x38   :  { %641 = vmatprep.subr.bf16.mxu1 %v640_v24  ;;  %v668_v23 = vpack.c.bf16 %v330_v22, %v328_v21  ;;  %v327_v24 = vld [vmem:[%s1217_s5 + $0xc0] sm:$0xff] }
  0x39   :  { %v670_v26 = vpack.c.bf16 %v329_v25, %v327_v24  ;;  %v359_v25 = vld [vmem:[%s1218_s6] sm:$0x3] }
  0x3a   :  { %669 = vmatprep.subr.bf16.mxu0 %v668_v23 }
  0x3b   :  { %643 = vmatpush1.bf16.msra.mxu1 %v642_v27  ;;  %671 = vmatpush1.bf16.msra.mxu0 %v670_v26  ;;  %v332_v27 = vld [vmem:[%s1217_s5 + $0xe8] sm:$0xff]  ;;  %v360_v26 = vld [vmem:[%s1219_s7] sm:$0x3] }
  0x3c   :  { %v672_v29 = vpack.c.bf16 %v334_v28, %v332_v27  ;;  %v366_v27 = vrot.slane %v359_v25, %v1068_v2  ;;  %v370_v28 = vrot.slane %v359_v25, %v1073_v4  ;;  %v455_v31 = vrot.slane %v360_v26, %v1073_v4 }
  0x3e   :  { %673 = vmatprep.subr.bf16.mxu0 %v672_v29  ;;  %v451_v29 = vrot.slane %v360_v26, %v1068_v2 }
  0x3f   :  { %675 = vmatpush1.bf16.msra.mxu0 %v674_v32 }
  0x40   :  { %677 = vmatprep.subr.bf16.mxu0 %v676_v35 }
  0x43   :  { %679 = vmatpush1.bf16.msra.mxu0 %v678_v38 }
  0x44   :  { %681 = vmatprep.subr.bf16.mxu0 %v680_v41 }
  0x47   :  { %683 = vmatpush1.bf16.msra.mxu0 %v682_v44 }
  0x48   :  { %685 = vmatprep.subr.bf16.mxu0 %v684_v47 }
  0x4b   :  { %687 = vmatpush1.bf16.msra.mxu0 %v686_v50 }
  0x4c   :  { %689 = vmatprep.subr.bf16.mxu0 %v688_v53 }
  0x4f   :  { %691 = vmatpush1.bf16.msra.mxu0 %v690_v56 }
  0x50   :  { %693 = vmatprep.subr.bf16.mxu0 %v692_v59 }
  0x53   :  { %695 = vmatpush1.bf16.msra.mxu0 %v694_v62 }
  0x54   :  { %697 = vmatprep.subr.bf16.mxu0 %v696_v3  ;;  %v502_v3 = vrot.slane %v361_v55, %v1068_v2 }
  0xdb   :  { %v127_v7 = vpop.f32.mrb[0].mxu0 }
  0xdc   :  { %v128_v8 = vadd.f32 %v127_v7, %v43_v5  ;;  %v129_v9 = vpop.f32.mrb[1].mxu0  ;;  %v355_v5 = vld [vmem:[%s1217_s5 + $0x1a0] sm:$0xff] }
  0xdd   :  { %v130_v10 = vadd.f32 %v129_v9, %v47_v6  ;;  %v357_v6 = vld [vmem:[%s1217_s5 + $0x1b0] sm:$0xff] }
  0xde   :  { %v576_v11 = vmul.f32 -1.442695, %v128_v8  ;;  %v698_v7 = vpack.c.bf16 %v357_v6, %v355_v5 }
  0xdf   :  { %v577_v12 = vmul.f32 -1.442695, %v130_v10 }
  0xe0   :  { %703 = vpow2.f32 %v576_v11  ;;  %699 = vmatpush1.bf16.msra.mxu0 %v698_v7  ;;  %v506_v7 = vrot.slane %v361_v55, %v1073_v4 }
  0xe1   :  { %705 = vpow2.f32 %v577_v12 }
  0xea   :  { %v704_v13 = vpop.eup %703 }
  0xeb   :  { %v706_v14 = vpop.eup %705  ;;  %v138_v15 = vadd.f32 1.0, %v704_v13 }
  0xec   :  { %v139_v16 = vadd.f32 1.0, %v706_v14 }
  0xed   :  { %707 = vrcp.f32 %v138_v15 }
  0xee   :  { %709 = vrcp.f32 %v139_v16 }
  0xf7   :  { %v708_v17 = vpop.eup %707 }
  0xf8   :  { %v710_v18 = vpop.eup %709  ;;  %v144_v20 = vmul.f32 %v708_v17, %v128_v8  ;;  %v202_v8 = vld [vmem:[%s1216_s4] sm:$0x3] }
  0xf9   :  { %v145_v19 = vmul.f32 %v710_v18, %v130_v10  ;;  %v207_v9 = vrot.slane %v202_v8, %v1068_v2  ;;  %v211_v10 = vrot.slane %v202_v8, %v1073_v4 }
  0xfb   :  { %578 = vmatprep.mubr.msk.f32.mxu1 %vm214_vm4, %v145_v19 }
  0xfc   :  { %283 = vmatmul.mubr.f32.vlgmr.msra.gmra.mrb[0].mxu1 %v144_v20 }
 0x1cf   :  { %v284_v11 = vpop.f32.mrb[0].mxu1 }
 0x1d0   :  { %v285_v12 = vadd.f32 %v284_v11, %v207_v9  ;;  %v286_v13 = vpop.f32.mrb[1].mxu1 }
 0x1d1   :  { %v287_v14 = vadd.f32 %v286_v13, %v211_v10 }
 0x1d2   :  { %v579_v15 = vmul.f32 -1.442695, %v285_v12 }
 0x1d3   :  { %v580_v16 = vmul.f32 -1.442695, %v287_v14 }
 0x1d4   :  { %711 = vpow2.f32 %v579_v15 }
 0x1d5   :  { %713 = vpow2.f32 %v580_v16 }
 0x1de   :  { %v712_v17 = vpop.eup %711 }
 0x1df   :  { %v714_v18 = vpop.eup %713  ;;  %v295_v19 = vadd.f32 1.0, %v712_v17 }
 0x1e0   :  { %v296_v20 = vadd.f32 1.0, %v714_v18 }
 0x1e1   :  { %715 = vrcp.f32 %v295_v19 }
 0x1e2   :  { %717 = vrcp.f32 %v296_v20 }
 0x1eb   :  { %v716_v21 = vpop.eup %715 }
 0x1ec   :  { %v718_v22 = vpop.eup %717  ;;  %v301_v24 = vmul.f32 %v716_v21, %v285_v12 }
 0x1ed   :  { %v302_v23 = vmul.f32 %v718_v22, %v287_v14 }
 0x1ef   :  { %581 = vmatprep.mubr.msk.f32.mxu0 %vm214_vm4, %v302_v23 }
 0x1f0   :  { %441 = vmatmul.mubr.f32.vlgmr.msra.gmra.mrb[2].mxu0 %v301_v24 }
 0x2c3   :  { %v442_v30 = vpop.f32.mrb[2].mxu0 }
 0x2c4   :  { %v1190_v32 = vadd.f32 %v442_v30, %v366_v27  ;;  %v444_v33 = vpop.f32.mrb[3].mxu0 }
 0x2c5   :  { %v445_v34 = vadd.f32 %v444_v33, %v370_v28 }
 0x2c6   :  { %v458_v35 = vsub.f32 %v451_v29, %v1190_v32 }
 0x2c7   :  { %v459_v36 = vsub.f32 %v455_v31, %v445_v34 }
 0x2c8   :  { %v466_v37 = vand.u32 2147483647, %v458_v35  ;;  %v460_v58 = vmax.f32 %v458_v35, 0.0  ;;  %vm462_vm7 = vcmp.ne.f32.partialorder %v458_v35, %v458_v35 }
 0x2c9   :  { %v467_v38 = vand.u32 2147483647, %v459_v36  ;;  %v461_v62 = vmax.f32 %v459_v36, 0.0  ;;  %vm463_vm8 = vcmp.ne.f32.partialorder %v459_v36, %v459_v36 }
 0x2ca   :  { %v468_v39 = vsub.f32 0.0, %v466_v37 }
 0x2cb   :  { %v469_v40 = vsub.f32 0.0, %v467_v38 }
 0x2cc   :  { %v470_v41 = vmul.f32 1.442695, %v468_v39 }
 0x2cd   :  { %v472_v42 = vmul.f32 1.442695, %v469_v40 }
 0x2ce   :  { %719 = vpow2.f32 %v470_v41 }
 0x2cf   :  { %721 = vpow2.f32 %v472_v42 }
 0x2d8   :  { %v720_v43 = vpop.eup %719 }
 0x2d9   :  { %v722_v44 = vpop.eup %721  ;;  %v474_v45 = vadd.f32 1.0, %v720_v43  ;;  %v477_v47 = vmul.f32 -0.5, %v720_v43  ;;  %v480_v50 = vand.u32 2147483647, %v720_v43 }
 0x2da   :  { %v483_v46 = vadd.f32 1.0, %v722_v44  ;;  %v486_v48 = vmul.f32 -0.5, %v722_v44  ;;  %v489_v52 = vand.u32 2147483647, %v722_v44 }
 0x2db   :  { %723 = vlog2.f32 %v474_v45  ;;  %v478_v49 = vadd.f32 1.0, %v477_v47  ;;  %vm481_vm5 = vcmp.lt.f32.partialorder %v480_v50, 0.0004427343 }
 0x2dc   :  { %725 = vlog2.f32 %v483_v46  ;;  %v487_v51 = vadd.f32 1.0, %v486_v48  ;;  %vm490_vm6 = vcmp.lt.f32.partialorder %v489_v52, 0.0004427343 }
 0x2dd   :  { %v479_v57 = vmul.f32 %v720_v43, %v478_v49 }
 0x2de   :  { %v488_v60 = vmul.f32 %v722_v44, %v487_v51 }
 0x2e5   :  { %v724_v53 = vpop.eup %723 }
 0x2e6   :  { %v726_v54 = vpop.eup %725  ;;  %v476_v56 = vmul.f32 0.6931472, %v724_v53 }
 0x2e7   :  { %v485_v59 = vmul.f32 0.6931472, %v726_v54 }
 0x2e8   :  { %v482_v61 = vsel %vm481_vm5, %v479_v57, %v476_v56 }
 0x2e9   :  { %v492_v63 = vadd.f32 %v482_v61, %v460_v58  ;;  %v491_v1 = vsel %vm490_vm6, %v488_v60, %v485_v59 }
 0x2ea   :  { %v493_v5 = vadd.f32 %v491_v1, %v461_v62 }
 0x2eb   :  { %v494_v6 = vsel %vm462_vm7, %v458_v35, %v492_v63 }
 0x2ec   :  { %v496_v8 = vsub.f32 %v451_v29, %v494_v6  ;;  %v495_v9 = vsel %vm463_vm8, %v459_v36, %v493_v5 }
 0x2ed   :  { %v497_v10 = vsub.f32 %v455_v31, %v495_v9  ;;  %v550_v31 = vand.u32 127, %v40_v0 }
 0x2ee   :  { %v509_v11 = vsub.f32 %v496_v8, %v502_v3 }
 0x2ef   :  { %v510_v12 = vsub.f32 %v497_v10, %v506_v7  ;;  %vm552_vm13 = vcmp.ge.s32.totalorder %v550_v31, 84 }
 0x2f0   :  { %v517_v13 = vand.u32 2147483647, %v509_v11  ;;  %v511_v33 = vmax.f32 %v509_v11, 0.0  ;;  %vm513_vm11 = vcmp.ne.f32.partialorder %v509_v11, %v509_v11 }
 0x2f1   :  { %v518_v14 = vand.u32 2147483647, %v510_v12  ;;  %v512_v36 = vmax.f32 %v510_v12, 0.0  ;;  %vm514_vm12 = vcmp.ne.f32.partialorder %v510_v12, %v510_v12 }
 0x2f2   :  { %v519_v15 = vsub.f32 0.0, %v517_v13 }
 0x2f3   :  { %v520_v16 = vsub.f32 0.0, %v518_v14 }
 0x2f4   :  { %v521_v17 = vmul.f32 1.442695, %v519_v15 }
 0x2f5   :  { %v523_v18 = vmul.f32 1.442695, %v520_v16 }
 0x2f6   :  { %727 = vpow2.f32 %v521_v17 }
 0x2f7   :  { %729 = vpow2.f32 %v523_v18 }
 0x300   :  { %v728_v19 = vpop.eup %727 }
 0x301   :  { %v730_v2 = vpop.eup %729  ;;  %v525_v20 = vadd.f32 1.0, %v728_v19  ;;  %v528_v4 = vmul.f32 -0.5, %v728_v19  ;;  %v531_v24 = vand.u32 2147483647, %v728_v19 }
 0x302   :  { %v534_v21 = vadd.f32 1.0, %v730_v2  ;;  %v537_v22 = vmul.f32 -0.5, %v730_v2  ;;  %v540_v26 = vand.u32 2147483647, %v730_v2 }
 0x303   :  { %731 = vlog2.f32 %v525_v20  ;;  %v529_v23 = vadd.f32 1.0, %v528_v4  ;;  %vm532_vm9 = vcmp.lt.f32.partialorder %v531_v24, 0.0004427343 }
 0x304   :  { %733 = vlog2.f32 %v534_v21  ;;  %v538_v25 = vadd.f32 1.0, %v537_v22  ;;  %vm541_vm10 = vcmp.lt.f32.partialorder %v540_v26, 0.0004427343 }
 0x305   :  { %v530_v30 = vmul.f32 %v728_v19, %v529_v23 }
 0x306   :  { %v539_v35 = vmul.f32 %v730_v2, %v538_v25 }
 0x30d   :  { %v732_v27 = vpop.eup %731 }
 0x30e   :  { %v734_v28 = vpop.eup %733  ;;  %v527_v29 = vmul.f32 0.6931472, %v732_v27 }
 0x30f   :  { %v536_v34 = vmul.f32 0.6931472, %v734_v28 }
 0x310   :  { %v533_v37 = vsel %vm532_vm9, %v530_v30, %v527_v29 }
 0x311   :  { %v542_v38 = vsel %vm541_vm10, %v539_v35, %v536_v34  ;;  %v543_v39 = vadd.f32 %v533_v37, %v511_v33 }
 0x312   :  { %v544_v40 = vadd.f32 %v542_v38, %v512_v36 }
 0x313   :  { %v545_v41 = vsel %vm513_vm11, %v509_v11, %v543_v39 }
 0x314   :  { %v546_v42 = vsel %vm514_vm12, %v510_v12, %v544_v40  ;;  %v547_v43 = vadd.f32 %v545_v41, %v502_v3 }
 0x315   :  { %v548_v0 = vadd.f32 %v546_v42, %v506_v7 }
 0x316   :  { %v554_v44 = vsel %vm552_vm13, %v547_v43, %v1190_v32 }
 0x317   :  { %556 = vst [vmem:[#allocation2] sm:$0xff] %v554_v44  ;;  %558 = vst.msk [vmem:[#allocation2 + $0x8] sm:$0xff] %vm557_vm14, %v548_v0 }
 0x318   :  { %746 = shalt.err (!%p743_p4)
}
 0x319   :  { %s747_s15 = scalar_lea.hbm %s1221_s9, 256 }
 0x31a   :  { %p748_p5 = scmp.ne.s32.totalorder %s1221_s9, %s747_s15  ;;  %p751_p6 = scmp.lt.u32.totalorder %s747_s15, %s1221_s9 }
 0x31c   :  { %p753_p7 = pnand %p751_p6, %p748_p5 }
 0x31e   :  { %756 = shalt.err (!%p753_p7)
}
 0x31f   :  { %568 = dma.vmem_to_hbm [thread:$0]  %s566_s11, 256, %s1221_s9, [#allocation3]  }
 0x320   :  { %757 = dma.done.wait [#allocation3], 256  }
 0x321   :  { %758 = vsyncadd [#allocation3], 4294967040 }
 0x322   :  { %572 = vsyncpa [#allocation3], 1 }

</bundles_post_ra>
